<compile_context>
chip_gen: v7x
topology: tpu7x:2x2x1
jax: 0.10.0
libtpu: 0.0.40
codegen_flags: <defaults>
</compile_context>

<pallas_src>
import functools
import math

import jax
import jax.numpy as jnp
import numpy as np
from jax.experimental import pallas as pl
from jax.experimental.pallas import tpu as pltpu

LOG_2PI = math.log(2.0 * math.pi)


def _round_up(a, b):
    return (a + b - 1) // b * b


# ---------------------------------------------------------------------------
# Kernel bodies.  Both compute, for one (TN, TC) output tile,
#   out[n, c] = bias[c] + sum_d x[n,d]^2 * (-0.5*iv[d,c]) + x[n,d] * (m*iv)[d,c]
# accumulating directly into the f32 output block (resident across the trailing
# reduction axis), with the per-class bias folded into the k==0 init.
# ---------------------------------------------------------------------------

def _kernel_resident(x_ref, rhs_q_ref, rhs_c_ref, bias_ref, out_ref, *, td):
    """grid = (N tiles, D tiles); rhs_* / bias are whole-array VMEM-resident."""
    k = pl.program_id(1)

    @pl.when(k == 0)
    def _init():
        out_ref[...] = jnp.broadcast_to(bias_ref[...], out_ref.shape)

    x = x_ref[...].astype(jnp.float32)            # f32 compute (bf16-safe)
    d0 = pl.multiple_of(k * td, 128)
    rq = rhs_q_ref[pl.ds(d0, td), :]              # aligned slice of resident RHS
    rc = rhs_c_ref[pl.ds(d0, td), :]
    # Two accumulating dots: no in-kernel concatenates, no per-step VMEM copies.
    out_ref[...] += jnp.dot(x * x, rq, preferred_element_type=jnp.float32)
    out_ref[...] += jnp.dot(x, rc, preferred_element_type=jnp.float32)


def _kernel_tiled(x_ref, rhs_q_ref, rhs_c_ref, bias_ref, out_ref):
    """grid = (N tiles, C tiles, D tiles); rhs_* streamed per (k, j) tile."""
    k = pl.program_id(2)

    @pl.when(k == 0)
    def _init():
        out_ref[...] = jnp.broadcast_to(bias_ref[...], out_ref.shape)

    x = x_ref[...].astype(jnp.float32)
    out_ref[...] += jnp.dot(x * x, rhs_q_ref[...], preferred_element_type=jnp.float32)
    out_ref[...] += jnp.dot(x, rhs_c_ref[...], preferred_element_type=jnp.float32)


def nclass_log_probs_per_class(x, class_means, class_log_stds, *,
                               tn_max=512, tc_max=512, td_max=512,
                               resident_rhs_budget_bytes=8 << 20):
    """Pallas-backed log_probs_per_class(x, sum_dims=True) -> [N, C] float32."""
    n, d = x.shape
    c, d2 = class_means.shape
    assert d == d2 and class_log_stds.shape == (c, d)

    # ---- parameter-side precompute (f32), hoisted out of the kernel ----------
    m = class_means.astype(jnp.float32)                    # [C, D]
    ls = class_log_stds.astype(jnp.float32)                # [C, D]
    iv = jnp.exp(-2.0 * ls)                                # inverse variance [C, D]
    rhs_q = (-0.5 * iv).T                                  # [D, C] quadratic weights
    rhs_c = (m * iv).T                                     # [D, C] cross weights
    bias = (-0.5 * jnp.sum(m * m * iv, axis=-1)
            - jnp.sum(ls, axis=-1)
            - 0.5 * d * LOG_2PI)[None, :]                  # [1, C], stays f32

    # ---- tile selection -------------------------------------------------------
    x_itemsize = jnp.dtype(x.dtype).itemsize
    sub = max(8, 32 // x_itemsize)                # dtype-aware sublane rounding
    tn = min(tn_max, _round_up(n, sub))
    td = min(td_max, _round_up(d, 128))
    n_p = _round_up(n, tn)
    d_p = _round_up(d, td)
    c_128 = _round_up(c, 128)                     # lane-dense output width

    # RHS resident (fetched once) whenever C fits one tile and the parameter
    # matrices are small; otherwise fall back to tiling over (k, j).
    resident = (c_128 <= tc_max) and (2 * d_p * c_128 * 4 <= resident_rhs_budget_bytes)
    if resident:
        tc = c_p = c_128
    else:
        tc = min(tc_max, c_128)
        while c_128 % tc:                         # keep tc a 128-multiple divisor
            tc -= 128
        c_p = c_128

    # ---- zero padding ---------------------------------------------------------
    if (n_p, d_p) != (n, d):
        x = jnp.pad(x, ((0, n_p - n), (0, d_p - d)))
    if (d_p, c_p) != (d, c):
        rhs_q = jnp.pad(rhs_q, ((0, d_p - d), (0, c_p - c)))
        rhs_c = jnp.pad(rhs_c, ((0, d_p - d), (0, c_p - c)))
    if c_p != c:
        bias = jnp.pad(bias, ((0, 0), (0, c_p - c)))

    # ---- specs / grid ---------------------------------------------------------
    if resident:
        grid = (n_p // tn, d_p // td)
        in_specs = [
            pl.BlockSpec((tn, td), lambda i, k: (i, k)),      # x: streamed once
            pl.BlockSpec((d_p, c_p), lambda i, k: (0, 0)),    # rhs_q: resident
            pl.BlockSpec((d_p, c_p), lambda i, k: (0, 0)),    # rhs_c: resident
            pl.BlockSpec((1, c_p), lambda i, k: (0, 0)),      # bias: resident
        ]
        out_specs = pl.BlockSpec((tn, c_p), lambda i, k: (i, 0))
        kernel = functools.partial(_kernel_resident, td=td)
        dim_sem = ("parallel", "arbitrary")
        param_buf = 2 * (2 * d_p * c_p + c_p) * 4
    else:
        grid = (n_p // tn, c_p // tc, d_p // td)
        in_specs = [
            pl.BlockSpec((tn, td), lambda i, j, k: (i, k)),
            pl.BlockSpec((td, tc), lambda i, j, k: (k, j)),
            pl.BlockSpec((td, tc), lambda i, j, k: (k, j)),
            pl.BlockSpec((1, tc), lambda i, j, k: (0, j)),
        ]
        out_specs = pl.BlockSpec((tn, tc), lambda i, j, k: (i, j))
        kernel = _kernel_tiled
        dim_sem = ("parallel", "parallel", "arbitrary")
        param_buf = 2 * (2 * td * tc + tc) * 4

    # Double-buffered x + output + parameters, plus headroom; clamp so the
    # request stays under every generation's physical VMEM (v7x: 64 MiB/TC).
    vmem_est = 2 * tn * td * x_itemsize + 2 * tn * tc * 4 + param_buf
    vmem_limit = int(max(32 << 20, min(56 << 20, vmem_est + (4 << 20))))

    out = pl.pallas_call(
        kernel,
        out_shape=jax.ShapeDtypeStruct((n_p, c_p), jnp.float32),
        grid_spec=pltpu.PrefetchScalarGridSpec(
            num_scalar_prefetch=0,
            grid=grid,
            in_specs=in_specs,
            out_specs=out_specs,
        ),
        compiler_params=pltpu.CompilerParams(
            dimension_semantics=dim_sem,
            vmem_limit_bytes=vmem_limit),
    )(x, rhs_q, rhs_c, bias)

    return out[:n, :c]


def nclass_independent_dist_forward(x, class_means, class_log_stds, y=None, **kw):
    """Mirror of NClassIndependentDist.forward (default fixed path).

    Returns (x, logdet) with logdet [N, C]; if y (int labels [N]) is given,
    gathers the per-sample class column -> [N] (glue done in plain JAX).
    """
    logdet = nclass_log_probs_per_class(x, class_means, class_log_stds, **kw)
    if y is not None:
        logdet = jnp.take_along_axis(logdet, y[:, None], axis=1)[:, 0]
    return x, logdet


def _reference_log_probs(x, means, log_stds):
    # pure-JAX reference of get_mixture_gaussian_log_probs(..., sum_dims=True)
    xf = x.astype(jnp.float32)[:, None, :]          # [N, 1, D]
    mf = means.astype(jnp.float32)[None, :, :]      # [1, C, D]
    lsf = log_stds.astype(jnp.float32)[None, :, :]  # [1, C, D]
    z = (xf - mf) * jnp.exp(-lsf)
    lp = -0.5 * (z * z) - lsf - 0.5 * LOG_2PI
    return jnp.sum(lp, axis=-1)                     # [N, C]


if __name__ == "__main__":
    key = jax.random.PRNGKey(0)

    # ---- main shapes consistent with the module: n_classes=4, n_dims=32, batch=8
    n_classes, n_dims, batch = 4, 32, 8
    kx, km, ks, kx2, km2, ks2 = jax.random.split(key, 6)
    x = jax.random.normal(kx, (batch, n_dims), dtype=jnp.float32)
    class_means = 0.1 * jax.random.normal(km, (n_classes, n_dims), dtype=jnp.float32)
    class_log_stds = 0.05 * jax.random.normal(ks, (n_classes, n_dims), dtype=jnp.float32)

    x_out, logdet = nclass_independent_dist_forward(x, class_means, class_log_stds)
    jax.block_until_ready(logdet)

    ref = _reference_log_probs(x, class_means, class_log_stds)
    np.testing.assert_allclose(np.asarray(logdet), np.asarray(ref), rtol=1e-5, atol=1e-4)
    np.testing.assert_allclose(np.asarray(x_out), np.asarray(x))
    assert logdet.shape == (batch, n_classes)

    # labeled path (y gather) sanity check
    y = jnp.array([0, 1, 2, 3, 0, 1, 2, 3], dtype=jnp.int32)
    _, logdet_y = nclass_independent_dist_forward(x, class_means, class_log_stds, y=y)
    jax.block_until_ready(logdet_y)
    np.testing.assert_allclose(
        np.asarray(logdet_y),
        np.asarray(jnp.take_along_axis(ref, y[:, None], axis=1)[:, 0]),
        rtol=1e-5, atol=1e-4)

    # ---- multi-D-tile resident path (exercises the in-kernel pl.ds RHS slicing)
    n2, c2, d2 = 16, 4, 300
    x2 = jax.random.normal(kx2, (n2, d2), dtype=jnp.float32)
    m2 = 0.1 * jax.random.normal(km2, (c2, d2), dtype=jnp.float32)
    ls2 = 0.05 * jax.random.normal(ks2, (c2, d2), dtype=jnp.float32)
    out2 = nclass_log_probs_per_class(x2, m2, ls2, td_max=128)
    jax.block_until_ready(out2)
    np.testing.assert_allclose(np.asarray(out2), np.asarray(_reference_log_probs(x2, m2, ls2)),
                               rtol=1e-5, atol=1e-3)

    # ---- forced tiled fallback path (large-parameter regime)
    out3 = nclass_log_probs_per_class(x2, m2, ls2, td_max=128,
                                      resident_rhs_budget_bytes=0)
    jax.block_until_ready(out3)
    np.testing.assert_allclose(np.asarray(out3), np.asarray(_reference_log_probs(x2, m2, ls2)),
                               rtol=1e-5, atol=1e-3)

    print("KERNEL_OK")
</pallas_src>

<mosaic_0001>
module attributes {stable_mosaic.version = 11 : i64} {
  func.func @_kernel_resident(%arg0: i32, %arg1: i32, %arg2: memref<8x128xf32, #tpu.memory_space<vmem>>, %arg3: memref<128x128xf32, #tpu.memory_space<vmem>>, %arg4: memref<128x128xf32, #tpu.memory_space<vmem>>, %arg5: memref<1x128xf32, #tpu.memory_space<vmem>>, %arg6: memref<8x128xf32, #tpu.memory_space<vmem>>) attributes {dimension_semantics = [#tpu.dimension_semantics<parallel>, #tpu.dimension_semantics<arbitrary>], iteration_bounds = array<i64: 1, 1>, scalar_prefetch = 0 : i64, scratch_operands = 0 : i64, tpu.core_type = #tpu.core_type<tc>, window_params = [{transform_indices = @transform_0, window_bounds = array<i64: 8, 128>}, {pipeline_mode = #tpu.pipeline_mode<synchronous>, transform_indices = @transform_1, window_bounds = array<i64: 128, 128>}, {pipeline_mode = #tpu.pipeline_mode<synchronous>, transform_indices = @transform_2, window_bounds = array<i64: 128, 128>}, {pipeline_mode = #tpu.pipeline_mode<synchronous>, transform_indices = @transform_3, window_bounds = array<i64: 1, 128>}, {transform_indices = @transform_4, window_bounds = array<i64: 8, 128>}]} {
    %c0_i32 = arith.constant 0 : i32
    %0 = arith.cmpi eq, %arg1, %c0_i32 : i32
    %1 = arith.extui %0 : i1 to i32
    %c0_i32_0 = arith.constant 0 : i32
    %2 = arith.cmpi ne, %1, %c0_i32_0 : i32
    scf.if %2 {
      %c0_13 = arith.constant 0 : index
      %c0_14 = arith.constant 0 : index
      %19 = vector.load %arg5[%c0_13, %c0_14] : memref<1x128xf32, #tpu.memory_space<vmem>>, vector<1x128xf32>
      %20 = vector.shape_cast %19 : vector<1x128xf32> to vector<1x128xf32>
      %21 = vector.broadcast %20 : vector<1x128xf32> to vector<8x128xf32>
      %c0_15 = arith.constant 0 : index
      %c0_16 = arith.constant 0 : index
      %22 = vector.load %arg6[%c0_15, %c0_16] : memref<8x128xf32, #tpu.memory_space<vmem>>, vector<8x128xf32>
      tpu.vector_store %arg6[%c0_15, %c0_16], %21 {strides = array<i32>} : memref<8x128xf32, #tpu.memory_space<vmem>>, vector<8x128xf32>,
    } else {
    }
    %c0 = arith.constant 0 : index
    %c0_1 = arith.constant 0 : index
    %3 = vector.load %arg2[%c0, %c0_1] : memref<8x128xf32, #tpu.memory_space<vmem>>, vector<8x128xf32>
    %c128_i32 = arith.constant 128 : i32
    %4 = arith.muli %arg1, %c128_i32 : i32
    %5 = tpu.assume_multiple %4, 128 : i32
    %6 = arith.index_cast %5 : i32 to index
    %c0_2 = arith.constant 0 : index
    %7 = vector.load %arg3[%6, %c0_2] : memref<128x128xf32, #tpu.memory_space<vmem>>, vector<128x128xf32>
    %8 = arith.index_cast %5 : i32 to index
    %c0_3 = arith.constant 0 : index
    %9 = vector.load %arg4[%8, %c0_3] : memref<128x128xf32, #tpu.memory_space<vmem>>, vector<128x128xf32>
    %c0_4 = arith.constant 0 : index
    %c0_5 = arith.constant 0 : index
    %10 = vector.load %arg6[%c0_4, %c0_5] : memref<8x128xf32, #tpu.memory_space<vmem>>, vector<8x128xf32>
    %11 = arith.mulf %3, %3 : vector<8x128xf32>
    %cst = arith.constant dense<0.000000e+00> : vector<8x128xf32>
    %12 = tpu.matmul %11, %7, %cst {dimension_numbers = #tpu.dot_dimension_numbers<[1], [0], [0], [1], [0, 0, 1, 1], [], []>} : vector<8x128xf32>, vector<128x128xf32>, vector<8x128xf32> -> vector<8x128xf32>
    %13 = arith.addf %10, %12 : vector<8x128xf32>
    %c0_6 = arith.constant 0 : index
    %c0_7 = arith.constant 0 : index
    %14 = vector.load %arg6[%c0_6, %c0_7] : memref<8x128xf32, #tpu.memory_space<vmem>>, vector<8x128xf32>
    tpu.vector_store %arg6[%c0_6, %c0_7], %13 {strides = array<i32>} : memref<8x128xf32, #tpu.memory_space<vmem>>, vector<8x128xf32>,
    %c0_8 = arith.constant 0 : index
    %c0_9 = arith.constant 0 : index
    %15 = vector.load %arg6[%c0_8, %c0_9] : memref<8x128xf32, #tpu.memory_space<vmem>>, vector<8x128xf32>
    %cst_10 = arith.constant dense<0.000000e+00> : vector<8x128xf32>
    %16 = tpu.matmul %3, %9, %cst_10 {dimension_numbers = #tpu.dot_dimension_numbers<[1], [0], [0], [1], [0, 0, 1, 1], [], []>} : vector<8x128xf32>, vector<128x128xf32>, vector<8x128xf32> -> vector<8x128xf32>
    %17 = arith.addf %15, %16 : vector<8x128xf32>
    %c0_11 = arith.constant 0 : index
    %c0_12 = arith.constant 0 : index
    %18 = vector.load %arg6[%c0_11, %c0_12] : memref<8x128xf32, #tpu.memory_space<vmem>>, vector<8x128xf32>
    tpu.vector_store %arg6[%c0_11, %c0_12], %17 {strides = array<i32>} : memref<8x128xf32, #tpu.memory_space<vmem>>, vector<8x128xf32>,
    return
  }
  func.func @transform_0(%arg0: i32, %arg1: i32) -> (i32, i32) {
    %c0_i32 = arith.constant 0 : i32
    return %arg0, %arg1 : i32, i32
  }
  func.func @transform_1(%arg0: i32, %arg1: i32) -> (i32, i32) {
    %c0_i32 = arith.constant 0 : i32
    %c0_i32_0 = arith.constant 0 : i32
    %c0_i32_1 = arith.constant 0 : i32
    return %c0_i32, %c0_i32_0 : i32, i32
  }
  func.func @transform_2(%arg0: i32, %arg1: i32) -> (i32, i32) {
    %c0_i32 = arith.constant 0 : i32
    %c0_i32_0 = arith.constant 0 : i32
    %c0_i32_1 = arith.constant 0 : i32
    return %c0_i32, %c0_i32_0 : i32, i32
  }
  func.func @transform_3(%arg0: i32, %arg1: i32) -> (i32, i32) {
    %c0_i32 = arith.constant 0 : i32
    %c0_i32_0 = arith.constant 0 : i32
    %c0_i32_1 = arith.constant 0 : i32
    return %c0_i32, %c0_i32_0 : i32, i32
  }
  func.func @transform_4(%arg0: i32, %arg1: i32) -> (i32, i32) {
    %c0_i32 = arith.constant 0 : i32
    %c0_i32_0 = arith.constant 0 : i32
    return %arg0, %c0_i32 : i32, i32
  }
}

</mosaic_0001>

<bundles_post_ra>
// kernel: tpu_custom_call.1
= control target key start
LH: loop header
LB: loop body
LE: loop exit
PB: predicated region body
PF: predicated region fallthrough
CT: control target
= control target key end

     0   :  { %9 = vsyncpa [#allocation3], 0  ;;  %s635_s0 = inlined_call_operand.hbm [shape: f32[8,128], index: 0, kind: input, shape index: {}]   ;;  %s636_s1 = inlined_call_operand.hbm [shape: f32[128,128], index: 1, kind: input, shape index: {}]   ;;  %s637_s2 = inlined_call_operand.hbm [shape: f32[128,128], index: 2, kind: input, shape index: {}]   ;;  %s638_s3 = inlined_call_operand.vmem [shape: f32[1,128], index: 3, kind: input, shape index: {}]   ;;  %s639_s4 = inlined_call_operand.hbm [shape: f32[8,128], index: 4, kind: output, shape index: {}]  }
   0x1   :  { %10 = vsyncpa [#allocation6], 0 }
   0x2   :  { %11 = vsyncpa [#allocation4], 0  ;;  %s528_s15 = smov [#allocation5]   ;;  %s434_s19 = scalar_lea.hbm %s636_s1, 2048 }
   0x3   :  { %s27_s16 = sshll.u32 %s528_s15, 4  ;;  %p435_p0 = scmp.ne.s32.totalorder %s636_s1, %s434_s19  ;;  %s28_s16 = int_to_ptr.vmem [resolvable:$true] %s27_s16 }
   0x4   :  { %p438_p1 = scmp.lt.u32.totalorder %s434_s19, %s636_s1 }
   0x6   :  { %p440_p2 = pnand %p438_p1, %p435_p0 }
   0x8   :  { %443 = shalt.err (!%p440_p2)
}
   0x9   :  { %s444_s24 = scalar_lea.vmem %s28_s16, 2048  ;;  %p449_p4 = scmp.lt.s32.totalorder %s28_s16, %s28_s16 }
   0xa   :  { %p445_p3 = scmp.ne.s32.totalorder %s28_s16, %s444_s24  ;;  %p450_p5 = scmp.lt.s32.totalorder %s444_s24, %s444_s24 }
   0xc   :  { %p451_p6 = por %p450_p5, %p449_p4 }
   0xe   :  { %p452_p7 = pnand %p451_p6, %p445_p3 }
  0x10   :  { %455 = shalt.err (!%p452_p7)
}
  0x11   :  { %s529_s25 = smov 128   ;;  %s530_s26 = smov 8  }
  0x12   :  { %33 = dma.hbm_to_vmem [thread:$0]  %s636_s1, 2048, %s28_s16, [#allocation6], %s529_s25, %s529_s25, %s530_s26  }
  0x13   :  { %s531_s29 = smov [#allocation2]   ;;  %s532_s5 = smov [#allocation7]  }
  0x14   :  { %s18_s30 = sshll.u32 %s531_s29, 4  ;;  %s39_s6 = sshll.u32 %s532_s5, 4  ;;  %s19_s30 = int_to_ptr.vmem [resolvable:$true] %s18_s30  ;;  %s40_s6 = int_to_ptr.vmem [resolvable:$true] %s39_s6 }
  0x15   :  { %s456_s9 = scalar_lea.hbm %s635_s0, 128 }
  0x16   :  { %p457_p8 = scmp.ne.s32.totalorder %s635_s0, %s456_s9  ;;  %p460_p9 = scmp.lt.u32.totalorder %s456_s9, %s635_s0 }
  0x18   :  { %p462_p10 = pnand %p460_p9, %p457_p8 }
  0x1a   :  { %465 = shalt.err (!%p462_p10)
}
  0x1b   :  { %s466_s1 = scalar_lea.vmem %s19_s30, 128  ;;  %p471_p12 = scmp.lt.s32.totalorder %s19_s30, %s19_s30 }
  0x1c   :  { %p467_p11 = scmp.ne.s32.totalorder %s19_s30, %s466_s1  ;;  %p472_p13 = scmp.lt.s32.totalorder %s466_s1, %s466_s1 }
  0x1e   :  { %p473_p0 = por %p472_p13, %p471_p12 }
  0x20   :  { %p474_p1 = pnand %p473_p0, %p467_p11 }
  0x22   :  { %477 = shalt.err (!%p474_p1)
}
  0x23   :  { %21 = dma.hbm_to_vmem [thread:$0]  %s635_s0, 128, %s19_s30, [#allocation3]  }
  0x24   :  { %s478_s18 = scalar_lea.hbm %s637_s2, 2048 }
  0x25   :  { %p479_p2 = scmp.ne.s32.totalorder %s637_s2, %s478_s18  ;;  %p482_p3 = scmp.lt.u32.totalorder %s478_s18, %s637_s2 }
  0x27   :  { %p484_p4 = pnand %p482_p3, %p479_p2 }
  0x29   :  { %487 = shalt.err (!%p484_p4)
}
  0x2a   :  { %s488_s23 = scalar_lea.vmem %s40_s6, 2048  ;;  %p493_p6 = scmp.lt.s32.totalorder %s40_s6, %s40_s6 }
  0x2b   :  { %p489_p5 = scmp.ne.s32.totalorder %s40_s6, %s488_s23  ;;  %p494_p7 = scmp.lt.s32.totalorder %s488_s23, %s488_s23 }
  0x2d   :  { %p495_p8 = por %p494_p7, %p493_p6 }
  0x2f   :  { %p496_p9 = pnand %p495_p8, %p489_p5 }
  0x31   :  { %499 = shalt.err (!%p496_p9)
}
  0x32   :  { %45 = dma.hbm_to_vmem [thread:$0]  %s637_s2, 2048, %s40_s6, [#allocation6], %s529_s25, %s529_s25, %s530_s26  }
  0x33   :  { %522 = dma.done.wait [#allocation3], 128  }
  0x34   :  { %523 = vsyncadd [#allocation3], 4294967168 }
  0x35   :  { %524 = dma.done.wait [#allocation6], 4096  }
  0x36   :  { %525 = vsyncadd [#allocation6], 4294963200  ;;  %v533_v0 = vmov 0.0|0.0   ;;  %vm534_vm0 = vmmov 0   ;;  %v535_v1 = vmov 0.0   ;;  %v72_v2 = vld [vmem:[#allocation5] sm:$0xff] }
  0x37   :  { %373 = vmatprep.subr.bf16.mxu1 %v533_v0  ;;  %397 = vmatprep.subr.bf16.mxu0 %v533_v0  ;;  %v73_v3 = vld [vmem:[#allocation5 + $0x8] sm:$0xff]  ;;  %v74_v4 = vld [vmem:[#allocation5 + $0x10] sm:$0xff]  ;;  %v75_v6 = vld [vmem:[#allocation5 + $0x18] sm:$0xff]  ;;  %s536_s26 = smov [#allocation8]  }
  0x38   :  { %335 = vmatprep.mubr.msk.f32.mxu1 %vm534_vm0, %v535_v1  ;;  %370 = vmatprep.mubr.msk.f32.mxu0 %vm534_vm0, %v535_v1  ;;  %v374_v5 = vpack.c.bf16 %v73_v3, %v72_v2  ;;  %v89_v7 = vld [vmem:[#allocation7] sm:$0xff]  ;;  %v90_v8 = vld [vmem:[#allocation7 + $0x8] sm:$0xff]  ;;  %v377_v9 = vpack.c.bf16 %v75_v6, %v74_v4  ;;  %v91_v11 = vld [vmem:[#allocation7 + $0x10] sm:$0xff]  ;;  %s258_s27 = sshll.u32 %s536_s26, 4  ;;  %s259_s27 = int_to_ptr.vmem [resolvable:$true] %s258_s27 }
  0x39   :  { %v398_v10 = vpack.c.bf16 %v90_v8, %v89_v7  ;;  %v92_v12 = vld [vmem:[#allocation7 + $0x18] sm:$0xff]  ;;  %v76_v13 = vld [vmem:[#allocation5 + $0x20] sm:$0xff]  ;;  %v77_v14 = vld [vmem:[#allocation5 + $0x28] sm:$0xff]  ;;  %s500_s28 = scalar_lea.vmem %s259_s27, 128  ;;  %p505_p11 = scmp.lt.s32.totalorder %s259_s27, %s259_s27 }
  0x3a   :  { %375 = vmatpush3.bf16.msra.mxu1 %v374_v5  ;;  %v401_v15 = vpack.c.bf16 %v92_v12, %v91_v11  ;;  %v93_v16 = vld [vmem:[#allocation7 + $0x20] sm:$0xff]  ;;  %v94_v17 = vld [vmem:[#allocation7 + $0x28] sm:$0xff]  ;;  %v380_v18 = vpack.c.bf16 %v77_v14, %v76_v13  ;;  %v78_v19 = vld [vmem:[#allocation5 + $0x30] sm:$0xff]  ;;  %p501_p10 = scmp.ne.s32.totalorder %s259_s27, %s500_s28  ;;  %p506_p12 = scmp.lt.s32.totalorder %s500_s28, %s500_s28 }
  0x3b   :  { %376 = vmatprep.subr.bf16.mxu1 %v533_v0  ;;  %399 = vmatpush3.bf16.msra.mxu0 %v398_v10  ;;  %v79_v20 = vld [vmem:[#allocation5 + $0x38] sm:$0xff]  ;;  %v404_v21 = vpack.c.bf16 %v94_v17, %v93_v16  ;;  %v95_v22 = vld [vmem:[#allocation7 + $0x30] sm:$0xff]  ;;  %v80_v25 = vld [vmem:[#allocation5 + $0x40] sm:$0xff] }
  0x3c   :  { %400 = vmatprep.subr.bf16.mxu0 %v533_v0  ;;  %v96_v23 = vld [vmem:[#allocation7 + $0x38] sm:$0xff]  ;;  %v383_v24 = vpack.c.bf16 %v79_v20, %v78_v19  ;;  %v81_v26 = vld [vmem:[#allocation5 + $0x48] sm:$0xff]  ;;  %v97_v28 = vld [vmem:[#allocation7 + $0x40] sm:$0xff]  ;;  %p507_p13 = por %p506_p12, %p505_p11 }
  0x3d   :  { %v407_v27 = vpack.c.bf16 %v96_v23, %v95_v22  ;;  %v98_v29 = vld [vmem:[#allocation7 + $0x48] sm:$0xff]  ;;  %v386_v30 = vpack.c.bf16 %v81_v26, %v80_v25  ;;  %v82_v31 = vld [vmem:[#allocation5 + $0x50] sm:$0xff]  ;;  %v83_v32 = vld [vmem:[#allocation5 + $0x58] sm:$0xff] }
  0x3e   :  { %378 = vmatpush3.bf16.msra.mxu1 %v377_v9  ;;  %v410_v33 = vpack.c.bf16 %v98_v29, %v97_v28  ;;  %v99_v34 = vld [vmem:[#allocation7 + $0x50] sm:$0xff]  ;;  %v100_v35 = vld [vmem:[#allocation7 + $0x58] sm:$0xff]  ;;  %v389_v36 = vpack.c.bf16 %v83_v32, %v82_v31  ;;  %v84_v37 = vld [vmem:[#allocation5 + $0x60] sm:$0xff]  ;;  %p508_p0 = pnand %p507_p13, %p501_p10 }
  0x3f   :  { %379 = vmatprep.subr.bf16.mxu1 %v533_v0  ;;  %402 = vmatpush3.bf16.msra.mxu0 %v401_v15  ;;  %v85_v38 = vld [vmem:[#allocation5 + $0x68] sm:$0xff]  ;;  %v413_v39 = vpack.c.bf16 %v100_v35, %v99_v34  ;;  %v101_v40 = vld [vmem:[#allocation7 + $0x60] sm:$0xff]  ;;  %v86_v43 = vld [vmem:[#allocation5 + $0x70] sm:$0xff] }
  0x40   :  { %403 = vmatprep.subr.bf16.mxu0 %v533_v0  ;;  %v102_v41 = vld [vmem:[#allocation7 + $0x68] sm:$0xff]  ;;  %v392_v42 = vpack.c.bf16 %v85_v38, %v84_v37  ;;  %v87_v44 = vld [vmem:[#allocation5 + $0x78] sm:$0xff]  ;;  %v103_v46 = vld [vmem:[#allocation7 + $0x70] sm:$0xff] }
  0x41   :  { %v416_v45 = vpack.c.bf16 %v102_v41, %v101_v40  ;;  %v104_v47 = vld [vmem:[#allocation7 + $0x78] sm:$0xff]  ;;  %v395_v48 = vpack.c.bf16 %v87_v44, %v86_v43 }
  0x42   :  { %381 = vmatpush3.bf16.msra.mxu1 %v380_v18  ;;  %v69_v49 = vld [vmem:[#allocation2] sm:$0xff]  ;;  %v419_v50 = vpack.c.bf16 %v104_v47, %v103_v46 }
  0x43   :  { %382 = vmatprep.subr.bf16.mxu1 %v533_v0  ;;  %405 = vmatpush3.bf16.msra.mxu0 %v404_v21  ;;  %v106_v51 = vmul.f32 %v69_v49, %v69_v49  ;;  %v268_v52 = vld [vmem:[%s638_s3] ss:$0 sm:$0xff] }
  0x44   :  { %406 = vmatprep.subr.bf16.mxu0 %v533_v0 }
  0x46   :  { %384 = vmatpush3.bf16.msra.mxu1 %v383_v24 }
  0x47   :  { %385 = vmatprep.subr.bf16.mxu1 %v533_v0  ;;  %408 = vmatpush3.bf16.msra.mxu0 %v407_v27 }
  0x48   :  { %409 = vmatprep.subr.bf16.mxu0 %v533_v0 }
  0x4a   :  { %387 = vmatpush3.bf16.msra.mxu1 %v386_v30 }
  0x4b   :  { %388 = vmatprep.subr.bf16.mxu1 %v533_v0  ;;  %411 = vmatpush3.bf16.msra.mxu0 %v410_v33 }
  0x4c   :  { %412 = vmatprep.subr.bf16.mxu0 %v533_v0 }
  0x4e   :  { %390 = vmatpush3.bf16.msra.mxu1 %v389_v36 }
  0x4f   :  { %391 = vmatprep.subr.bf16.mxu1 %v533_v0  ;;  %414 = vmatpush3.bf16.msra.mxu0 %v413_v39 }
  0x50   :  { %415 = vmatprep.subr.bf16.mxu0 %v533_v0 }
  0x52   :  { %393 = vmatpush3.bf16.msra.mxu1 %v392_v42 }
  0x53   :  { %394 = vmatprep.subr.bf16.mxu1 %v533_v0  ;;  %417 = vmatpush3.bf16.msra.mxu0 %v416_v45 }
  0x54   :  { %418 = vmatprep.subr.bf16.mxu0 %v533_v0 }
  0x56   :  { %396 = vmatpush3.bf16.msra.mxu1 %v395_v48 }
  0x57   :  { %420 = vmatpush3.bf16.msra.mxu0 %v419_v50 }
  0x59   :  { %336 = vmatmul.mubr.f32.vlgmr.msra.gmra.mrb[0].mxu1 %v106_v51 }
  0x5a   :  { %371 = vmatmul.mubr.f32.vlgmr.msra.gmra.mrb[0].mxu0 %v69_v49 }
 0x12c   :  { %v173_v53 = vpop.f32.mrb[0].mxu1 }
 0x12d   :  { %v177_v54 = vadd.f32 %v268_v52, %v173_v53  ;;  %v337_v55 = vpop.f32.mrb[1].mxu1  ;;  %v246_v56 = vpop.f32.mrb[0].mxu0 }
 0x12e   :  { %v372_v58 = vpop.f32.mrb[1].mxu0 }
 0x12f   :  { %v424_v57 = vadd.f32 %v246_v56, %v177_v54 }
 0x131   :  { %251 = vst [vmem:[#allocation8] sm:$0xff] %v424_v57 }
 0x132   :  { %511 = shalt.err (!%p508_p0)
}
 0x133   :  { %s512_s3 = scalar_lea.hbm %s639_s4, 128 }
 0x134   :  { %p513_p1 = scmp.ne.s32.totalorder %s639_s4, %s512_s3  ;;  %p516_p2 = scmp.lt.u32.totalorder %s512_s3, %s639_s4 }
 0x136   :  { %p518_p3 = pnand %p516_p2, %p513_p1 }
 0x138   :  { %521 = shalt.err (!%p518_p3)
}
 0x139   :  { %261 = dma.vmem_to_hbm [thread:$0]  %s259_s27, 128, %s639_s4, [#allocation4]  }
 0x13a   :  { %526 = dma.done.wait [#allocation4], 128  }
 0x13b   :  { %527 = vsyncadd [#allocation4], 4294967168 }
 0x13c   :  { %265 = vsyncpa [#allocation3], 1 }
 0x13d   :  { %266 = vsyncpa [#allocation6], 1 }
 0x13e   :  { %267 = vsyncpa [#allocation4], 1 }

</bundles_post_ra>
